<compile_context>
chip_gen: v6e
topology: v6e:2x2x1
jax: 0.10.0
libtpu: 0.0.40
codegen_flags: <defaults>
</compile_context>

<pallas_src>
import jax
import jax.numpy as jnp
from jax import lax
from jax.experimental import pallas as pl
from jax.experimental.pallas import tpu as pltpu

LANE = 128
HIDDEN = 32
MAX_TILE_B = 32768            # per-grid-step batch columns (VMEM ~5 MiB with lane chunking)
FALLBACK_MAX_B = 2048         # below this, plain jnp (XLA-fused) beats the custom-call overhead
VMEM_LIMIT_BYTES = 32 * 1024 * 1024


def _round_up(n, m):
    return ((n + m - 1) // m) * m


def _pick_chunk(tile_b):
    """Largest lane-chunk (<=512, multiple of 128) that divides tile_b."""
    for c in (512, 384, 256, 128):
        if tile_b % c == 0:
            return c
    return 128  # unreachable: tile_b is always a multiple of 128


def _choose_tiling(B):
    """Returns (padded_B, tile_b, grid_b) with padded_B = grid_b * tile_b.

    Guarantees >=2 grid steps whenever padded_B >= 256 so the 'parallel' batch
    axis can be sharded across both v7x TensorCores, and balances the tiles so
    padding waste stays <= 128 columns per step.
    """
    padded = _round_up(B, LANE)
    if padded < 2 * LANE:
        return padded, padded, 1
    grid_b = max(2, pl.cdiv(padded, MAX_TILE_B))
    tile_b = _round_up(pl.cdiv(padded, grid_b), LANE)
    grid_b = pl.cdiv(padded, tile_b)
    return grid_b * tile_b, tile_b, grid_b


def _a2c_value_kernel(xT_ref, w1_ref, b1_ref, w2_ref, b2_ref, w3_ref, b3_ref, o_ref):
    # Feature-major compute: hidden on sublanes, batch on lanes (lane-dense output).
    w1 = w1_ref[...]          # (32, in_dim)
    b1 = b1_ref[...]          # (32, 1)
    w2 = w2_ref[...]          # (32, 32)
    b2 = b2_ref[...]          # (32, 1)
    w3 = w3_ref[...]          # (1, 32)  -- layer-3 row, used as an M=1 MXU matmul
    b3 = b3_ref[...]          # (1, 1)

    tile_b = o_ref.shape[-1]              # static at trace time
    chunk = _pick_chunk(tile_b)
    n_chunks = tile_b // chunk

    def mlp_cols(xc):
        # xc: (in_dim, chunk) f32
        h1 = jnp.maximum(jnp.dot(w1, xc, preferred_element_type=jnp.float32) + b1, 0.0)
        h2 = jnp.maximum(jnp.dot(w2, h1, preferred_element_type=jnp.float32) + b2, 0.0)
        return jnp.dot(w3, h2, preferred_element_type=jnp.float32) + b3   # (1, chunk)

    if n_chunks == 1:
        o_ref[...] = mlp_cols(xT_ref[...]).astype(o_ref.dtype)
    else:
        def body(c, carry):
            start = pl.multiple_of(c * chunk, chunk)
            xc = xT_ref[:, pl.ds(start, chunk)]
            o_ref[:, pl.ds(start, chunk)] = mlp_cols(xc).astype(o_ref.dtype)
            return carry

        lax.fori_loop(0, n_chunks, body, None,
                      unroll=True if n_chunks <= 8 else 8)


def _pallas_value_t(xT, params, tile_b, grid_b):
    """xT: (in_dim, padded_B) f32 with padded_B = grid_b * tile_b.  Returns (1, padded_B)."""
    in_dim, padded_B = xT.shape
    w1, b1 = params["w1"], params["b1"]
    w2, b2 = params["w2"], params["b2"]
    w3, b3 = params["w3"], params["b3"]

    flops = 2 * padded_B * (in_dim * HIDDEN + HIDDEN * HIDDEN + HIDDEN)
    bytes_accessed = 4 * (xT.size + padded_B + w1.size + b1.size
                          + w2.size + b2.size + w3.size + b3.size)

    return pl.pallas_call(
        _a2c_value_kernel,
        out_shape=jax.ShapeDtypeStruct((1, padded_B), jnp.float32),
        grid=(grid_b,),
        in_specs=[
            pl.BlockSpec((in_dim, tile_b), lambda i: (0, i)),    # x^T, tiled over batch lanes
            pl.BlockSpec((HIDDEN, in_dim), lambda i: (0, 0)),    # w1 (VMEM-resident)
            pl.BlockSpec((HIDDEN, 1), lambda i: (0, 0)),         # b1
            pl.BlockSpec((HIDDEN, HIDDEN), lambda i: (0, 0)),    # w2
            pl.BlockSpec((HIDDEN, 1), lambda i: (0, 0)),         # b2
            pl.BlockSpec((1, HIDDEN), lambda i: (0, 0)),         # w3 row (MXU layer 3)
            pl.BlockSpec((1, 1), lambda i: (0, 0)),              # b3
        ],
        out_specs=pl.BlockSpec((1, tile_b), lambda i: (0, i)),   # lane-dense output
        compiler_params=pltpu.CompilerParams(
            dimension_semantics=("parallel",),                   # shard batch steps across TCs (v7x)
            vmem_limit_bytes=VMEM_LIMIT_BYTES,
        ),
        cost_estimate=pl.CostEstimate(
            flops=flops, transcendentals=0, bytes_accessed=bytes_accessed
        ),
    )(xT, w1, b1, w2, b2, w3, b3)


def a2c_value_forward_feature_major(xT, params, *, force_pallas=False):
    """Forward pass with x already laid out feature-major: xT (in_dim, B).
    Avoids the wrapper transpose HBM pass entirely.  Returns (B, 1) float32."""
    in_dim, B = xT.shape
    xT = xT.astype(jnp.float32)   # mirrors PyTorch x.float()

    if not force_pallas and B <= FALLBACK_MAX_B:
        # Tiny-MLP path: let XLA fuse it; custom-call + layout ops would dominate.
        return a2c_value_ref(xT.T, params)

    padded_B, tile_b, grid_b = _choose_tiling(B)
    if padded_B != B:
        # Single fused zero-fill + dynamic_update_slice (no separate jnp.pad pass).
        xT = jnp.zeros((in_dim, padded_B), jnp.float32).at[:, :B].set(xT)

    out_t = _pallas_value_t(xT, params, tile_b, grid_b)     # (1, padded_B)
    return out_t[:, :B].T                                   # (B, 1); padded tail sliced off


def a2c_value_forward(x, params, *, force_pallas=False):
    """x: (B, in_dim), like the PyTorch module.  Returns (B, 1) float32.
    Under jax.jit the transpose fuses into the padding update-slice (one HBM pass)."""
    x = x.astype(jnp.float32)
    return a2c_value_forward_feature_major(x.T, params, force_pallas=force_pallas)


def init_params(key, in_dim, hidden=HIDDEN):
    """nn.Linear-style U(-1/sqrt(fan_in), 1/sqrt(fan_in)) init, PyTorch (out, in) layout."""
    def linear(k, fan_in, fan_out):
        kw, kb = jax.random.split(k)
        bound = 1.0 / jnp.sqrt(jnp.float32(fan_in))
        w = jax.random.uniform(kw, (fan_out, fan_in), jnp.float32, -bound, bound)
        b = jax.random.uniform(kb, (fan_out,), jnp.float32, -bound, bound)
        return w, b

    k1, k2, k3 = jax.random.split(key, 3)
    w1, b1 = linear(k1, in_dim, hidden)
    w2, b2 = linear(k2, hidden, hidden)
    w3, b3 = linear(k3, hidden, 1)
    return {
        "w1": w1, "b1": b1.reshape(hidden, 1),   # biases as (32,1) columns (lane-broadcast)
        "w2": w2, "b2": b2.reshape(hidden, 1),
        "w3": w3,                                # (1, 32) row -> M=1 MXU dot for layer 3
        "b3": b3.reshape(1, 1),                  # (1, 1)
    }


def a2c_value_ref(x, p):
    """Pure-JAX reference matching the PyTorch forward (also the small-batch fallback)."""
    x = x.astype(jnp.float32)
    h1 = jnp.maximum(x @ p["w1"].T + p["b1"][:, 0], 0.0)
    h2 = jnp.maximum(h1 @ p["w2"].T + p["b2"][:, 0], 0.0)
    return h2 @ p["w3"].T + p["b3"][:, 0]


if __name__ == "__main__":
    key = jax.random.PRNGKey(0)
    k_x1, k_x2, k_p = jax.random.split(key, 3)

    IN_DIM = 4                       # input_shape = (4,)
    params = init_params(k_p, IN_DIM, hidden=HIDDEN)

    # 1) Small batch through the Pallas kernel (force past the jnp fallback).
    B1 = 8
    x1 = jax.random.normal(k_x1, (B1, IN_DIM), dtype=jnp.float32)
    out1 = jax.block_until_ready(a2c_value_forward(x1, params, force_pallas=True))
    ref1 = a2c_value_ref(x1, params)
    assert out1.shape == (B1, 1), out1.shape
    assert jnp.allclose(out1, ref1, atol=1e-5, rtol=1e-5), (out1, ref1)

    # 2) Non-multiple-of-128 batch: exercises fused pad + the 2-step "parallel" grid.
    B2 = 300
    x2 = jax.random.normal(k_x2, (B2, IN_DIM), dtype=jnp.float32)
    out2 = jax.block_until_ready(a2c_value_forward(x2, params, force_pallas=True))
    ref2 = a2c_value_ref(x2, params)
    assert out2.shape == (B2, 1), out2.shape
    assert jnp.allclose(out2, ref2, atol=1e-5, rtol=1e-5)

    # 3) Default small-batch path (pure-jnp fallback, no pallas_call).
    out_fb = jax.block_until_ready(a2c_value_forward(x1, params))
    assert jnp.allclose(out_fb, ref1, atol=1e-6, rtol=1e-6)

    print("KERNEL_OK")
</pallas_src>

<mosaic_0001>
module attributes {stable_mosaic.version = 11 : i64} {
  func.func @_a2c_value_kernel(%arg0: i32, %arg1: memref<4x128xf32, #tpu.memory_space<vmem>>, %arg2: memref<32x4xf32, #tpu.memory_space<vmem>>, %arg3: memref<32x1xf32, #tpu.memory_space<vmem>>, %arg4: memref<32x32xf32, #tpu.memory_space<vmem>>, %arg5: memref<32x1xf32, #tpu.memory_space<vmem>>, %arg6: memref<1x32xf32, #tpu.memory_space<vmem>>, %arg7: memref<1x1xf32, #tpu.memory_space<vmem>>, %arg8: memref<1x128xf32, #tpu.memory_space<vmem>>) attributes {dimension_semantics = [#tpu.dimension_semantics<parallel>], iteration_bounds = array<i64: 1>, scalar_prefetch = 0 : i64, scratch_operands = 0 : i64, tpu.core_type = #tpu.core_type<tc>, window_params = [{transform_indices = @transform_0, window_bounds = array<i64: 4, 128>}, {pipeline_mode = #tpu.pipeline_mode<synchronous>, transform_indices = @transform_1, window_bounds = array<i64: 32, 4>}, {pipeline_mode = #tpu.pipeline_mode<synchronous>, transform_indices = @transform_2, window_bounds = array<i64: 32, 1>}, {pipeline_mode = #tpu.pipeline_mode<synchronous>, transform_indices = @transform_3, window_bounds = array<i64: 32, 32>}, {pipeline_mode = #tpu.pipeline_mode<synchronous>, transform_indices = @transform_4, window_bounds = array<i64: 32, 1>}, {pipeline_mode = #tpu.pipeline_mode<synchronous>, transform_indices = @transform_5, window_bounds = array<i64: 1, 32>}, {pipeline_mode = #tpu.pipeline_mode<synchronous>, transform_indices = @transform_6, window_bounds = array<i64: 1, 1>}, {transform_indices = @transform_7, window_bounds = array<i64: 1, 128>}]} {
    %c0 = arith.constant 0 : index
    %c0_0 = arith.constant 0 : index
    %0 = vector.load %arg2[%c0, %c0_0] : memref<32x4xf32, #tpu.memory_space<vmem>>, vector<32x4xf32>
    %c0_1 = arith.constant 0 : index
    %c0_2 = arith.constant 0 : index
    %1 = vector.load %arg3[%c0_1, %c0_2] : memref<32x1xf32, #tpu.memory_space<vmem>>, vector<32x1xf32>
    %c0_3 = arith.constant 0 : index
    %c0_4 = arith.constant 0 : index
    %2 = vector.load %arg4[%c0_3, %c0_4] : memref<32x32xf32, #tpu.memory_space<vmem>>, vector<32x32xf32>
    %c0_5 = arith.constant 0 : index
    %c0_6 = arith.constant 0 : index
    %3 = vector.load %arg5[%c0_5, %c0_6] : memref<32x1xf32, #tpu.memory_space<vmem>>, vector<32x1xf32>
    %c0_7 = arith.constant 0 : index
    %c0_8 = arith.constant 0 : index
    %4 = vector.load %arg6[%c0_7, %c0_8] : memref<1x32xf32, #tpu.memory_space<vmem>>, vector<1x32xf32>
    %c0_9 = arith.constant 0 : index
    %c0_10 = arith.constant 0 : index
    %5 = vector.load %arg7[%c0_9, %c0_10] : memref<1x1xf32, #tpu.memory_space<vmem>>, vector<1x1xf32>
    %c0_11 = arith.constant 0 : index
    %c0_12 = arith.constant 0 : index
    %6 = vector.load %arg1[%c0_11, %c0_12] : memref<4x128xf32, #tpu.memory_space<vmem>>, vector<4x128xf32>
    %cst = arith.constant dense<0.000000e+00> : vector<32x128xf32>
    %7 = tpu.matmul %0, %6, %cst {dimension_numbers = #tpu.dot_dimension_numbers<[1], [0], [0], [1], [0, 0, 1, 1], [], []>} : vector<32x4xf32>, vector<4x128xf32>, vector<32x128xf32> -> vector<32x128xf32>
    %8 = vector.broadcast %1 : vector<32x1xf32> to vector<32x128xf32>
    %9 = arith.addf %7, %8 : vector<32x128xf32>
    %cst_13 = arith.constant 0.000000e+00 : f32
    %10 = vector.broadcast %cst_13 : f32 to vector<32x128xf32>
    %11 = arith.maximumf %9, %10 : vector<32x128xf32>
    %cst_14 = arith.constant dense<0.000000e+00> : vector<32x128xf32>
    %12 = tpu.matmul %2, %11, %cst_14 {dimension_numbers = #tpu.dot_dimension_numbers<[1], [0], [0], [1], [0, 0, 1, 1], [], []>} : vector<32x32xf32>, vector<32x128xf32>, vector<32x128xf32> -> vector<32x128xf32>
    %13 = vector.broadcast %3 : vector<32x1xf32> to vector<32x128xf32>
    %14 = arith.addf %12, %13 : vector<32x128xf32>
    %cst_15 = arith.constant 0.000000e+00 : f32
    %15 = vector.broadcast %cst_15 : f32 to vector<32x128xf32>
    %16 = arith.maximumf %14, %15 : vector<32x128xf32>
    %cst_16 = arith.constant dense<0.000000e+00> : vector<1x128xf32>
    %17 = tpu.matmul %4, %16, %cst_16 {dimension_numbers = #tpu.dot_dimension_numbers<[1], [0], [0], [1], [0, 0, 1, 1], [], []>} : vector<1x32xf32>, vector<32x128xf32>, vector<1x128xf32> -> vector<1x128xf32>
    %18 = vector.broadcast %5 : vector<1x1xf32> to vector<1x128xf32>
    %19 = arith.addf %17, %18 : vector<1x128xf32>
    %c0_17 = arith.constant 0 : index
    %c0_18 = arith.constant 0 : index
    %20 = vector.load %arg8[%c0_17, %c0_18] : memref<1x128xf32, #tpu.memory_space<vmem>>, vector<1x128xf32>
    tpu.vector_store %arg8[%c0_17, %c0_18], %19 {strides = array<i32>} : memref<1x128xf32, #tpu.memory_space<vmem>>, vector<1x128xf32>,
    return
  }
  func.func @transform_0(%arg0: i32) -> (i32, i32) {
    %c0_i32 = arith.constant 0 : i32
    %c0_i32_0 = arith.constant 0 : i32
    return %c0_i32, %arg0 : i32, i32
  }
  func.func @transform_1(%arg0: i32) -> (i32, i32) {
    %c0_i32 = arith.constant 0 : i32
    %c0_i32_0 = arith.constant 0 : i32
    %c0_i32_1 = arith.constant 0 : i32
    return %c0_i32, %c0_i32_0 : i32, i32
  }
  func.func @transform_2(%arg0: i32) -> (i32, i32) {
    %c0_i32 = arith.constant 0 : i32
    %c0_i32_0 = arith.constant 0 : i32
    %c0_i32_1 = arith.constant 0 : i32
    return %c0_i32, %c0_i32_0 : i32, i32
  }
  func.func @transform_3(%arg0: i32) -> (i32, i32) {
    %c0_i32 = arith.constant 0 : i32
    %c0_i32_0 = arith.constant 0 : i32
    %c0_i32_1 = arith.constant 0 : i32
    return %c0_i32, %c0_i32_0 : i32, i32
  }
  func.func @transform_4(%arg0: i32) -> (i32, i32) {
    %c0_i32 = arith.constant 0 : i32
    %c0_i32_0 = arith.constant 0 : i32
    %c0_i32_1 = arith.constant 0 : i32
    return %c0_i32, %c0_i32_0 : i32, i32
  }
  func.func @transform_5(%arg0: i32) -> (i32, i32) {
    %c0_i32 = arith.constant 0 : i32
    %c0_i32_0 = arith.constant 0 : i32
    %c0_i32_1 = arith.constant 0 : i32
    return %c0_i32, %c0_i32_0 : i32, i32
  }
  func.func @transform_6(%arg0: i32) -> (i32, i32) {
    %c0_i32 = arith.constant 0 : i32
    %c0_i32_0 = arith.constant 0 : i32
    %c0_i32_1 = arith.constant 0 : i32
    return %c0_i32, %c0_i32_0 : i32, i32
  }
  func.func @transform_7(%arg0: i32) -> (i32, i32) {
    %c0_i32 = arith.constant 0 : i32
    %c0_i32_0 = arith.constant 0 : i32
    return %c0_i32, %arg0 : i32, i32
  }
}

</mosaic_0001>

<bundles_post_ra>
// kernel: tpu_custom_call.1
= control target key start
LH: loop header
LB: loop body
LE: loop exit
PB: predicated region body
PF: predicated region fallthrough
CT: control target
= control target key end

     0   :  { %s595_s0 = inlined_call_operand.vmem [shape: f32[4,128], index: 0, kind: input, shape index: {}]   ;;  %s596_s1 = inlined_call_operand.vmem [shape: f32[32,4], index: 1, kind: input, shape index: {}]   ;;  %s597_s2 = inlined_call_operand.vmem [shape: f32[32,1], index: 2, kind: input, shape index: {}]   ;;  %s598_s3 = inlined_call_operand.vmem [shape: f32[32,32], index: 3, kind: input, shape index: {}]   ;;  %s599_s4 = inlined_call_operand.vmem [shape: f32[32,1], index: 4, kind: input, shape index: {}]   ;;  %s600_s5 = inlined_call_operand.vmem [shape: f32[1,32], index: 5, kind: input, shape index: {}]   ;;  %s601_s6 = inlined_call_operand.<no memory space> [shape: f32[1,1], index: 6, kind: input, shape index: {}]   ;;  %s602_s7 = inlined_call_operand.hbm [shape: f32[1,128], index: 7, kind: output, shape index: {}]  }
   0x1   :  { %v12_v0 = vstv %s601_s6 }
   0x2   :  { %13 = vst [vmem:[#allocation2] sm:$0x1] %v12_v0 }
   0x3   :  { %v47_v1 = vld [vmem:[%s595_s0] sm:$0xf]  ;;  %vm81_vm0 = vcmask 1043456   ;;  %vm68_vm1 = vcmask 31744   ;;  %v30_v3 = vld [vmem:[%s596_s1 + $0x8] sm:$0xff]  ;;  %v31_v4 = vld [vmem:[%s596_s1 + $0x10] sm:$0xff] }
   0x4   :  { %v29_v2 = vld [vmem:[%s596_s1] sm:$0xff]  ;;  %421 = vmatprep.subr.msk.mxu0 %vm81_vm0, %v47_v1  ;;  %v36_v5 = vld [vmem:[%s597_s2 + $0x18] sm:$0xff]  ;;  %v482_v6 = vmov 0   ;;  %v34_v7 = vld [vmem:[%s597_s2 + $0x8] sm:$0xff] }
   0x5   :  { %423 = vmatprep.mubr.msk.f32.mxu0 %vm68_vm1, %v29_v2  ;;  %422 = vmatpush3.msk.msra.mxu0 %vm81_vm0, %v47_v1  ;;  %v32_v8 = vld [vmem:[%s596_s1 + $0x18] sm:$0xff]  ;;  %v35_v9 = vld [vmem:[%s597_s2 + $0x10] sm:$0xff] }
   0x6   :  { %458 = vset.pattern.permute.xlu0 %v482_v6  ;;  %424 = vmatmul.mubr.msk.f32.vlgmr.msra.gmra.mxu0 %vm68_vm1, %v30_v3 }
   0x7   :  { %65 = vperm.xlu0 %458, %v36_v5   ;;  %426 = vmatprep.mubr.msk.f32.mxu0 %vm68_vm1, %v31_v4 }
   0x8   :  { %459 = vset.pattern.permute.xlu1 %v482_v6 }
   0x9   :  { %14 = vsyncpa [#allocation4], 0  ;;  %55 = vperm.xlu1 %459, %v34_v7   ;;  %v33_v10 = vld [vmem:[%s597_s2] sm:$0xff]  ;;  %v44_v11 = vld [vmem:[%s599_s4 + $0x18] sm:$0xff]  ;;  %vm194_vm2 = vcmask 261120   ;;  %v483_v36 = vmov 0.0   ;;  %v301_v54 = vlaneseq }
   0xa   :  { %427 = vmatmul.mubr.msk.f32.gmra.mxu0 %vm68_vm1, %v32_v8  ;;  %v43_v12 = vld [vmem:[%s599_s4 + $0x10] sm:$0xff]  ;;  %v42_v13 = vld [vmem:[%s599_s4 + $0x8] sm:$0xff]  ;;  %v41_v14 = vld [vmem:[%s599_s4] sm:$0xff]  ;;  %443 = vmatprep.subr.mxu0 %v483_v36  ;;  %vm484_vm3 = vmmov 0   ;;  %s485_s6 = smov [#allocation3]  }
   0xb   :  { %60 = vperm.xlu0 %458, %v35_v9   ;;  %v46_v15 = vld [vmem:[#allocation2] sm:$0x1]  ;;  %v38_v33 = vld [vmem:[%s598_s3 + $0x8] sm:$0xff]  ;;  %v39_v34 = vld [vmem:[%s598_s3 + $0x10] sm:$0xff]  ;;  %451 = vmatprep.mubr.msk.f32.mxu0 %vm484_vm3, %v483_v36  ;;  %v302_v55 = vshrl.u32 %v301_v54, 7  ;;  %s385_s10 = sshll.u32 %s485_s6, 4  ;;  %s386_s10 = int_to_ptr.vmem [resolvable:$true] %s385_s10 }
   0xc   :  { %v37_v16 = vld [vmem:[%s598_s3] sm:$0xff]  ;;  %v40_v35 = vld [vmem:[%s598_s3 + $0x18] sm:$0xff]  ;;  %s460_s11 = scalar_lea.vmem %s386_s10, 16  ;;  %s464_s0 = scalar_lea.vmem %s386_s10, 32 }
   0xd   :  { %50 = vperm.xlu1 %459, %v33_v10   ;;  %437 = vmatprep.mubr.msk.f32.mxu1 %vm194_vm2, %v37_v16  ;;  %v45_v53 = vld [vmem:[%s600_s5] sm:$0x1]  ;;  %v303_v56 = vsub.s32 0, %v302_v55  ;;  %p461_p0 = scmp.ne.s32.totalorder %s386_s10, %s460_s11  ;;  %p465_p1 = scmp.lt.s32.totalorder %s386_s10, %s386_s10 }
   0xe   :  { %p466_p2 = scmp.lt.s32.totalorder %s464_s0, %s460_s11 }
   0xf   :  { %191 = vperm.xlu0 %458, %v44_v11  }
  0x10   :  { %p467_p3 = por %p466_p2, %p465_p1 }
  0x11   :  { %186 = vperm.xlu1 %459, %v43_v12  }
  0x12   :  { %p468_p4 = pnand %p467_p3, %p461_p0 }
  0x13   :  { %181 = vperm.xlu0 %458, %v42_v13  }
  0x15   :  { %176 = vperm.xlu1 %459, %v41_v14  }
  0x17   :  { %298 = vperm.xlu0 %458, %v46_v15  }
  0x82   :  { %v66_v17 = vpop.permute.xlu0 %65 }
  0x84   :  { %v56_v19 = vpop.permute.xlu1 %55 }
  0x86   :  { %v61_v23 = vpop.permute.xlu0 %60 }
  0x88   :  { %v51_v28 = vpop.permute.xlu1 %50 }
  0x8a   :  { %v192_v37 = vpop.permute.xlu0 %191 }
  0x8c   :  { %v187_v39 = vpop.permute.xlu1 %186 }
  0x8e   :  { %v182_v43 = vpop.permute.xlu0 %181 }
  0x90   :  { %v177_v48 = vpop.permute.xlu1 %176 }
  0x92   :  { %v299_v57 = vpop.permute.xlu0 %298 }
  0x93   :  { %v304_v58 = vrot.slane %v299_v57, %v303_v56 }
  0xc6   :  { %v425_v18 = vpop.f32.mrf.mxu0 }
  0xc7   :  { %v157_v25 = vadd.f32 %v425_v18, %v56_v19 }
  0xc8   :  { %v151_v20 = vpop.f32.mrf.mxu0 }
  0xc9   :  { %v152_v29 = vadd.f32 %v151_v20, %v51_v28  ;;  %v171_v31 = vmax.f32 %v157_v25, 0.0 }
  0xca   :  { %v428_v21 = vpop.f32.mrf.mxu0 }
  0xcb   :  { %v167_v22 = vadd.f32 %v428_v21, %v66_v17  ;;  %v170_v32 = vmax.f32 %v152_v29, 0.0 }
  0xcc   :  { %v161_v24 = vpop.f32.mrf.mxu0 }
  0xcd   :  { %v173_v26 = vmax.f32 %v167_v22, 0.0  ;;  %v162_v27 = vadd.f32 %v161_v24, %v61_v23 }
  0xcf   :  { %v172_v30 = vmax.f32 %v162_v27, 0.0  ;;  %429 = vmatprep.subr.mxu1 %v173_v26 }
  0xd0   :  { %430 = vmatpush3.msra.mxu1 %v173_v26 }
  0xd1   :  { %431 = vmatprep.subr.mxu1 %v172_v30 }
  0xd2   :  { %432 = vmatpush3.msra.mxu1 %v172_v30 }
  0xd3   :  { %433 = vmatprep.subr.mxu1 %v171_v31 }
  0xd4   :  { %434 = vmatpush3.msra.mxu1 %v171_v31 }
  0xd5   :  { %435 = vmatprep.subr.mxu1 %v170_v32 }
  0xd6   :  { %436 = vmatpush3.msra.mxu1 %v170_v32 }
  0xd7   :  { %438 = vmatmul.mubr.msk.f32.vlgmr.msra.gmra.mxu1 %vm194_vm2, %v38_v33 }
  0xd8   :  { %440 = vmatprep.mubr.msk.f32.mxu1 %vm194_vm2, %v39_v34 }
  0xdb   :  { %441 = vmatmul.mubr.msk.f32.gmra.mxu1 %vm194_vm2, %v40_v35 }
 0x197   :  { %v439_v38 = vpop.f32.mrf.mxu1 }
 0x198   :  { %v279_v45 = vadd.f32 %v439_v38, %v182_v43 }
 0x199   :  { %v273_v40 = vpop.f32.mrf.mxu1 }
 0x19a   :  { %v274_v49 = vadd.f32 %v273_v40, %v177_v48  ;;  %v293_v51 = vmax.f32 %v279_v45, 0.0 }
 0x19b   :  { %v442_v41 = vpop.f32.mrf.mxu1 }
 0x19c   :  { %v289_v42 = vadd.f32 %v442_v41, %v192_v37  ;;  %v292_v52 = vmax.f32 %v274_v49, 0.0 }
 0x19d   :  { %v283_v44 = vpop.f32.mrf.mxu1 }
 0x19e   :  { %v295_v46 = vmax.f32 %v289_v42, 0.0  ;;  %v284_v47 = vadd.f32 %v283_v44, %v187_v39 }
 0x1a0   :  { %v294_v50 = vmax.f32 %v284_v47, 0.0  ;;  %444 = vmatpush3.msra.mxu0 %v295_v46 }
 0x1a1   :  { %445 = vmatprep.subr.mxu0 %v483_v36 }
 0x1a2   :  { %446 = vmatpush3.msra.mxu0 %v294_v50 }
 0x1a3   :  { %447 = vmatprep.subr.mxu0 %v483_v36 }
 0x1a4   :  { %448 = vmatpush3.msra.mxu0 %v293_v51 }
 0x1a5   :  { %449 = vmatprep.subr.mxu0 %v483_v36 }
 0x1a6   :  { %450 = vmatpush3.msra.mxu0 %v292_v52 }
 0x1a7   :  { %452 = vmatmul.mubr.msk.f32.vlgmr.msra.gmra.mxu0 %vm194_vm2, %v45_v53 }
 0x267   :  { %v374_v59 = vpop.f32.mrf.mxu0 }
 0x268   :  { %v375_v60 = vadd.f32 %v374_v59, %v304_v58 }
 0x269   :  { %v453_v61 = vpop.f32.mrf.mxu0 }
 0x26a   :  { %378 = vst [vmem:[#allocation3] sm:$0x1] %v375_v60 }
 0x26b   :  { %471 = shalt.err (!%p468_p4)
}
 0x26c   :  { %388 = dma.vmem_to_hbm [thread:$0]  %s386_s10, 16, %s602_s7, [#allocation4]  }
 0x26d   :  { %480 = dma.done.wait [#allocation4], 16  }
 0x26e   :  { %481 = vsyncadd [#allocation4], 4294967280 }
 0x26f   :  { %392 = vsyncpa [#allocation4], 1 }

</bundles_post_ra>
